<compile_context>
chip_gen: v7x
topology: tpu7x:2x2x1
jax: 0.10.0
libtpu: 0.0.40
codegen_flags: <defaults>
</compile_context>

<pallas_src>
import jax
import jax.numpy as jnp
from jax.experimental import pallas as pl
from jax.experimental.pallas import tpu as pltpu


def _matmul_kernel(x_ref, s_ref, b_ref, o_ref):
    # x_ref : VMEM (bm, K)   flattened per-batch conv-transpose coefficients
    # s_ref : VMEM (K, N)    scattered-weight matrix (resident across steps)
    # b_ref : SMEM (1,)      bias (out_channels == 1)
    # o_ref : VMEM (bm, N)   lane-dense output slab for this row-block
    acc = jnp.dot(x_ref[...], s_ref[...], preferred_element_type=jnp.float32)
    o_ref[...] = (acc + b_ref[0]).astype(o_ref.dtype)


def _build_scatter_matrix(weight, kH, kW):
    """(C, H, W) weight -> (C*kH*kW, Ho*Wo) scattered-weight matrix S.

    Row (c, p, q) of S is weight[c] embedded at offset (p, q) inside an
    (Ho, Wo) = (H+kH-1, W+kW-1) zero canvas, flattened row-major, so that
    conv_transpose2d(weight, x_b) == x_b.reshape(C*kH*kW) @ S.
    Pure layout plumbing of the fixed parameter; done once in the wrapper.
    """
    C, H, W = weight.shape
    Ho, Wo = H + kH - 1, W + kW - 1
    wpad = jnp.pad(weight, ((0, 0), (0, kH - 1), (0, kW - 1)))   # (C, Ho, Wo)
    # pad >= shift, so roll never wraps a nonzero value around.
    rows = [jnp.roll(wpad, (p, q), axis=(1, 2))
            for p in range(kH) for q in range(kW)]               # (p, q) order
    s = jnp.stack(rows, axis=1)                                  # (C, kH*kW, Ho, Wo)
    return s.reshape(C * kH * kW, Ho * Wo)


def liconv_transpose(x, weight, bias, *, block_m=256):
    """x: (B, C, kH, kW), weight: (C, H, W), bias: (1,) -> (B, 1, H+kH-1, W+kW-1)."""
    B, C, kH, kW = x.shape
    Cw, H, W = weight.shape
    assert Cw == C
    Ho, Wo = H + kH - 1, W + kW - 1
    K = C * kH * kW
    N = Ho * Wo

    x2d = x.reshape(B, K).astype(jnp.float32)
    s = _build_scatter_matrix(weight.astype(jnp.float32), kH, kW)   # (K, N)
    b = bias.astype(jnp.float32).reshape(1)

    # One grid step for small B; tile M (multiple of 8) only if B grows large.
    bm = B if B <= block_m else block_m
    grid = (pl.cdiv(B, bm),)

    out2d = pl.pallas_call(
        _matmul_kernel,
        out_shape=jax.ShapeDtypeStruct((B, N), jnp.float32),
        grid_spec=pltpu.PrefetchScalarGridSpec(
            num_scalar_prefetch=0,
            grid=grid,
            in_specs=[
                # per-step row block of flattened inputs (lane-dense, K last)
                pl.BlockSpec((bm, K), lambda i: (i, 0)),
                # scattered-weight matrix resident in VMEM every step
                pl.BlockSpec((K, N), lambda i: (0, 0)),
                # bias scalar in SMEM
                pl.BlockSpec(memory_space=pltpu.MemorySpace.SMEM),
            ],
            out_specs=pl.BlockSpec((bm, N), lambda i: (i, 0)),
        ),
        compiler_params=pltpu.CompilerParams(
            # batch rows are independent -> shard across v7x's 2 TensorCores
            dimension_semantics=("parallel",)),
    )(x2d, s, b)

    return out2d.reshape(B, 1, Ho, Wo)


def reference(x, weight, bias):
    """Independent reference via XLA conv: conv_transpose(W, x_b) per batch."""
    B, C, kH, kW = x.shape
    _, H, Wd = weight.shape
    lhs = weight[None]  # (1, C, H, Wd)
    outs = []
    for b in range(B):
        k = x[b, :, ::-1, ::-1][None]  # (O=1, I=C, kH, kW), flipped -> true conv
        o = jax.lax.conv_general_dilated(
            lhs, k, window_strides=(1, 1),
            padding=[(kH - 1, kH - 1), (kW - 1, kW - 1)],
            dimension_numbers=("NCHW", "OIHW", "NCHW"))
        outs.append(o[0])
    return jnp.stack(outs) + bias[0]


if __name__ == "__main__":
    key = jax.random.PRNGKey(0)
    kx, kw = jax.random.split(key)

    B, C = 2, 4            # batch, in_channels
    H = Wd = 16            # mat_size (learnable matrix spatial size)
    kH = kW = 3            # spatial size of the input (acts as the kernel)

    # weight init: kaiming_normal_ on torch shape (1, C, H, W)
    # fan_in = C * H * W, gain = sqrt(2)  ->  std = sqrt(2 / (C*H*W))
    std = (2.0 / (C * H * Wd)) ** 0.5
    weight = jax.random.normal(kw, (C, H, Wd), jnp.float32) * std
    bias = jnp.zeros((1,), jnp.float32)            # module inits bias to zeros
    x = jax.random.normal(kx, (B, C, kH, kW), jnp.float32)

    out = liconv_transpose(x, weight, bias)
    out = jax.block_until_ready(out)

    ref = reference(x, weight, bias)
    assert out.shape == (B, 1, H + kH - 1, Wd + kW - 1), out.shape
    err = float(jnp.max(jnp.abs(out - ref)))
    assert err < 1e-3, f"max abs err {err}"
    print("KERNEL_OK")
</pallas_src>

<mosaic_0001>
module attributes {stable_mosaic.version = 11 : i64} {
  func.func @_matmul_kernel(%arg0: i32, %arg1: memref<2x36xf32, #tpu.memory_space<vmem>>, %arg2: memref<36x324xf32, #tpu.memory_space<vmem>>, %arg3: memref<1xf32, #tpu.memory_space<smem>>, %arg4: memref<2x324xf32, #tpu.memory_space<vmem>>) attributes {dimension_semantics = [#tpu.dimension_semantics<parallel>], iteration_bounds = array<i64: 1>, scalar_prefetch = 0 : i64, scratch_operands = 0 : i64, tpu.core_type = #tpu.core_type<tc>, window_params = [{transform_indices = @transform_0, window_bounds = array<i64: 2, 36>}, {pipeline_mode = #tpu.pipeline_mode<synchronous>, transform_indices = @transform_1, window_bounds = array<i64: 36, 324>}, {transform_indices = @transform_2, window_bounds = array<i64: 1>}, {transform_indices = @transform_3, window_bounds = array<i64: 2, 324>}]} {
    %c0 = arith.constant 0 : index
    %c0_0 = arith.constant 0 : index
    %0 = vector.load %arg1[%c0, %c0_0] : memref<2x36xf32, #tpu.memory_space<vmem>>, vector<2x36xf32>
    %c0_1 = arith.constant 0 : index
    %c0_2 = arith.constant 0 : index
    %1 = vector.load %arg2[%c0_1, %c0_2] : memref<36x324xf32, #tpu.memory_space<vmem>>, vector<36x324xf32>
    %cst = arith.constant dense<0.000000e+00> : vector<2x324xf32>
    %2 = tpu.matmul %0, %1, %cst {dimension_numbers = #tpu.dot_dimension_numbers<[1], [0], [0], [1], [0, 0, 1, 1], [], []>} : vector<2x36xf32>, vector<36x324xf32>, vector<2x324xf32> -> vector<2x324xf32>
    %c0_3 = arith.constant 0 : index
    %3 = memref.load %arg3[%c0_3] : memref<1xf32, #tpu.memory_space<smem>>
    %4 = vector.broadcast %3 : f32 to vector<2x324xf32>
    %5 = arith.addf %2, %4 : vector<2x324xf32>
    %c0_4 = arith.constant 0 : index
    %c0_5 = arith.constant 0 : index
    %6 = vector.load %arg4[%c0_4, %c0_5] : memref<2x324xf32, #tpu.memory_space<vmem>>, vector<2x324xf32>
    tpu.vector_store %arg4[%c0_4, %c0_5], %5 {strides = array<i32>} : memref<2x324xf32, #tpu.memory_space<vmem>>, vector<2x324xf32>,
    return
  }
  func.func @transform_0(%arg0: i32) -> (i32, i32) {
    %c0_i32 = arith.constant 0 : i32
    %c0_i32_0 = arith.constant 0 : i32
    return %arg0, %c0_i32 : i32, i32
  }
  func.func @transform_1(%arg0: i32) -> (i32, i32) {
    %c0_i32 = arith.constant 0 : i32
    %c0_i32_0 = arith.constant 0 : i32
    %c0_i32_1 = arith.constant 0 : i32
    return %c0_i32, %c0_i32_0 : i32, i32
  }
  func.func @transform_2(%arg0: i32) -> i32 {
    %c0_i32 = arith.constant 0 : i32
    %c0_i32_0 = arith.constant 0 : i32
    return %c0_i32 : i32
  }
  func.func @transform_3(%arg0: i32) -> (i32, i32) {
    %c0_i32 = arith.constant 0 : i32
    %c0_i32_0 = arith.constant 0 : i32
    return %arg0, %c0_i32 : i32, i32
  }
}

</mosaic_0001>

<bundles_post_ra>
// kernel: tpu_custom_call.1
= control target key start
LH: loop header
LB: loop body
LE: loop exit
PB: predicated region body
PF: predicated region fallthrough
CT: control target
= control target key end

     0   :  { %9 = vsyncpa [#allocation4], 0  ;;  %s396_s0 = inlined_call_operand.vmem [shape: f32[2,36], index: 0, kind: input, shape index: {}]   ;;  %s397_s1 = inlined_call_operand.hbm [shape: f32[36,324], index: 1, kind: input, shape index: {}]   ;;  %s398_s2 = inlined_call_operand.<no memory space> [shape: f32[1], index: 2, kind: input, shape index: {}]   ;;  %s399_s3 = inlined_call_operand.hbm [shape: f32[2,324], index: 3, kind: output, shape index: {}]  }
   0x1   :  { %10 = vsyncpa [#allocation5], 0  ;;  %s338_s12 = smov [#allocation3]   ;;  %s290_s16 = scalar_lea.hbm %s397_s1, 1920 }
   0x2   :  { %s18_s13 = sshll.u32 %s338_s12, 4  ;;  %p291_p0 = scmp.ne.s32.totalorder %s397_s1, %s290_s16  ;;  %s19_s13 = int_to_ptr.vmem [resolvable:$true] %s18_s13 }
   0x3   :  { %p294_p1 = scmp.lt.u32.totalorder %s290_s16, %s397_s1 }
   0x5   :  { %p296_p2 = pnand %p294_p1, %p291_p0 }
   0x7   :  { %299 = shalt.err (!%p296_p2)
}
   0x8   :  { %s300_s21 = scalar_lea.vmem %s19_s13, 1920  ;;  %p305_p4 = scmp.lt.s32.totalorder %s19_s13, %s19_s13 }
   0x9   :  { %p301_p3 = scmp.ne.s32.totalorder %s19_s13, %s300_s21  ;;  %p306_p5 = scmp.lt.s32.totalorder %s300_s21, %s300_s21 }
   0xb   :  { %p307_p6 = por %p306_p5, %p305_p4 }
   0xd   :  { %p308_p7 = pnand %p307_p6, %p301_p3 }
   0xf   :  { %311 = shalt.err (!%p308_p7)
}
  0x10   :  { %s339_s22 = smov 384   ;;  %s340_s23 = smov 24  }
  0x11   :  { %24 = dma.hbm_to_vmem [thread:$0]  %s397_s1, 1920, %s19_s13, [#allocation4], %s339_s22, %s339_s22, %s340_s23  }
  0x12   :  { %334 = dma.done.wait [#allocation4], 1920  }
  0x13   :  { %335 = vsyncadd [#allocation4], 4294965376  ;;  %v341_v0 = vmov 0.0|0.0   ;;  %v342_v1 = vmov 0.0   ;;  %vm343_vm0 = vmmov 0   ;;  %v32_v2 = vld [vmem:[#allocation3 + $0x8] sm:$0xff]  ;;  %v210_v26 = vlaneseq }
  0x14   :  { %276 = vmatprep.subr.bf16.mxu1 %v341_v0  ;;  %126 = vmatprep.mubr.f32.mxu0 %v342_v1  ;;  %v35_v3 = vld [vmem:[#allocation3 + $0x20] sm:$0xff]  ;;  %v34_v6 = vld [vmem:[#allocation3 + $0x18] sm:$0xff]  ;;  %v33_v7 = vld [vmem:[#allocation3 + $0x10] sm:$0xff]  ;;  %vm52_vm1 = vcmask 1043456   ;;  %vm48_vm2 = vcmask 293888   ;;  %v47_v29 = vstv %s398_s2  ;;  %vm223_vm3 = vcmask 1041408  }
  0x15   :  { %265 = vmatprep.mubr.msk.f32.mxu1 %vm343_vm0, %v342_v1  ;;  %v31_v4 = vld [vmem:[#allocation3] sm:$0xff]  ;;  %v268_v5 = vpack.c.bf16 %v35_v3, %v32_v2  ;;  %v36_v8 = vld [vmem:[#allocation3 + $0x28] sm:$0xff]  ;;  %v38_v11 = vld [vmem:[#allocation3 + $0x38] sm:$0xff]  ;;  %v344_v24 = vmov 1983009808   ;;  %v211_v28 = vshrl.u32 %v210_v26, 7 }
  0x16   :  { %v270_v9 = vpack.c.bf16 %v34_v6, %v31_v4  ;;  %v277_v10 = vpack.c.bf16 %v36_v8, %v33_v7  ;;  %v41_v12 = vld [vmem:[#allocation3 + $0x50] sm:$0xff]  ;;  %v40_v15 = vld [vmem:[#allocation3 + $0x48] sm:$0xff]  ;;  %v39_v16 = vld [vmem:[#allocation3 + $0x40] sm:$0xff]  ;;  %v208_v25 = vunpack.c.l.s4 %v344_v24  ;;  %vm224_vm4 = vcmask 1043458  }
  0x17   :  { %v37_v13 = vld [vmem:[#allocation3 + $0x30] sm:$0xff]  ;;  %269 = vmatprep.subr.bf16.mxu0 %v268_v5  ;;  %v272_v14 = vpack.c.bf16 %v41_v12, %v38_v11  ;;  %v42_v17 = vld [vmem:[#allocation3 + $0x58] sm:$0xff]  ;;  %v44_v20 = vld [vmem:[#allocation3 + $0x68] sm:$0xf]  ;;  %vm226_vm6 = vcmask 553988  }
  0x18   :  { %271 = vmatpush1.bf16.msra.mxu0 %v270_v9  ;;  %278 = vmatpush3.bf16.msra.mxu1 %v277_v10  ;;  %v274_v18 = vpack.c.bf16 %v40_v15, %v37_v13  ;;  %v280_v19 = vpack.c.bf16 %v42_v17, %v39_v16  ;;  %v43_v21 = vld [vmem:[#allocation3 + $0x60] sm:$0xf]  ;;  %v45_v22 = vld [vmem:[#allocation3 + $0x70] sm:$0xf]  ;;  %v209_v27 = vunpack.c.0.s8 %v208_v25  ;;  %vm225_vm5 = vmor %vm224_vm4, %vm223_vm3 }
  0x19   :  { %273 = vmatprep.subr.bf16.mxu0 %v272_v14  ;;  %279 = vmatprep.subr.bf16.mxu1 %v341_v0  ;;  %v30_v23 = vld [vmem:[%s396_s0] sm:$0x3]  ;;  %s345_s0 = smov [#allocation6]   ;;  %vm227_vm7 = vmor %vm226_vm6, %vm225_vm5 }
  0x1a   :  { %v212_v31 = vsub.s32 %v209_v27, %v211_v28  ;;  %s235_s29 = sshll.u32 %s345_s0, 4  ;;  %s236_s29 = int_to_ptr.vmem [resolvable:$true] %s235_s29 }
  0x1b   :  { %s312_s2 = scalar_lea.vmem %s236_s29, 96  ;;  %p317_p9 = scmp.lt.s32.totalorder %s236_s29, %s236_s29 }
  0x1c   :  { %275 = vmatpush1.bf16.msra.mxu0 %v274_v18  ;;  %281 = vmatpush3.bf16.msra.mxu1 %v280_v19  ;;  %p313_p8 = scmp.ne.s32.totalorder %s236_s29, %s312_s2  ;;  %p318_p10 = scmp.lt.s32.totalorder %s312_s2, %s312_s2 }
  0x1d   :  { %244 = vmatprep.subr.msk.mxu0 %vm52_vm1, %v44_v20  ;;  %263 = vmatprep.subr.mxu1 %v342_v1 }
  0x1e   :  { %p319_p11 = por %p318_p10, %p317_p9 }
  0x20   :  { %245 = vmatpush1.msk.msra.mxu0 %vm52_vm1, %v43_v21  ;;  %264 = vmatpush3.msk.msra.mxu1 %vm52_vm1, %v45_v22  ;;  %p320_p12 = pnand %p319_p11, %p313_p8 }
  0x21   :  { %246 = vmatmul.mubr.msk.f32.vlgmr.msra.gmra.mrb[0].mxu0 %vm48_vm2, %v30_v23  ;;  %266 = vmatmul.mubr.msk.f32.vlgmr.msra.gmra.mrb[0].mxu1 %vm48_vm2, %v30_v23 }
  0xf4   :  { %v128_v30 = vpop.f32.mrb[0].mxu0  ;;  %v199_v32 = vpop.f32.mrb[0].mxu1 }
  0xf5   :  { %v129_v33 = vadd.f32 %v128_v30, %v47_v29  ;;  %v130_v34 = vpop.f32.mrb[1].mxu0  ;;  %v200_v35 = vadd.f32 %v199_v32, %v47_v29  ;;  %v267_v36 = vpop.f32.mrb[1].mxu1 }
  0xf6   :  { %v131_v37 = vadd.f32 %v130_v34, %v47_v29 }
  0xf7   :  { %v220_v39 = vrot.slane %v200_v35, %v212_v31 }
  0xf8   :  { %v206_v38 = vcombine.low %v129_v33, %v131_v37 }
  0xfa   :  { %v213_v40 = vrot.slane %v206_v38, %v212_v31 }
  0xfc   :  { %v221_v41 = vcombine.low %v213_v40, %v220_v39 }
  0xfe   :  { %228 = vst.msk [vmem:[#allocation6] sm:$0x3f] %vm227_vm7, %v221_v41 }
  0xff   :  { %323 = shalt.err (!%p320_p12)
}
 0x100   :  { %s324_s5 = scalar_lea.hbm %s399_s3, 96 }
 0x101   :  { %p325_p13 = scmp.ne.s32.totalorder %s399_s3, %s324_s5  ;;  %p328_p0 = scmp.lt.u32.totalorder %s324_s5, %s399_s3 }
 0x103   :  { %p330_p1 = pnand %p328_p0, %p325_p13 }
 0x105   :  { %333 = shalt.err (!%p330_p1)
}
 0x106   :  { %238 = dma.vmem_to_hbm [thread:$0]  %s236_s29, 96, %s399_s3, [#allocation5]  }
 0x107   :  { %336 = dma.done.wait [#allocation5], 96  }
 0x108   :  { %337 = vsyncadd [#allocation5], 4294967200 }
 0x109   :  { %242 = vsyncpa [#allocation4], 1 }
 0x10a   :  { %243 = vsyncpa [#allocation5], 1 }

</bundles_post_ra>
